<compile_context>
chip_gen: v7x
topology: tpu7x:2x2x1
jax: 0.10.0
libtpu: 0.0.40
codegen_flags: <defaults>
</compile_context>

<pallas_src>
import jax
import jax.numpy as jnp
from jax.experimental import pallas as pl
from jax.experimental.pallas import tpu as pltpu

# Logical model dims (from the PyTorch module)
D_IN = 385
D_H1 = 200
D_RED = 192
D_H2 = 200
D_OUT = 385

# Lane-padded (multiple-of-128) dims used only for the MXU operands in VMEM
P_IN = 512
P_H1 = 256
P_RED = 256
P_H2 = 256
P_OUT = 512

MAX_TILE_B = 1024                      # per-step batch-tile cap
VMEM_LIMIT_BYTES = 48 * 1024 * 1024    # explicit scoped-VMEM budget (< 64 MiB v7x physical)


def _round_up(n, m):
    return ((n + m - 1) // m) * m


def autoencoder_kernel(x_ref,
                       w1_ref, b1_ref,
                       w2_ref, b2_ref,
                       w3_ref, b3_ref,
                       w4_ref, b4_ref,
                       out_ref, red_ref):
    """Fused enc1->tanh->enc2->tanh->dec1->tanh->dec2->tanh for one batch tile.

    HBM traffic stays at logical widths (x: 385 lanes, out: 385, red: 192);
    all 128-alignment padding for the MXU happens in VMEM.
    """
    tb = x_ref.shape[0]

    # bf16 MXU operands (cast is a no-op if the caller already feeds bf16);
    # lane-pad 385 -> 512 in VMEM so every matmul dim is 128-aligned.  The
    # zero padding is load-bearing: padded lanes stay exactly 0 downstream.
    x = x_ref[...].astype(jnp.bfloat16)
    x = jnp.concatenate(
        [x, jnp.zeros((tb, P_IN - D_IN), jnp.bfloat16)], axis=1)

    # f32 accumulation on the MXU, f32 bias-add + tanh on the VPU/EUP.
    z1 = jnp.dot(x, w1_ref[...], preferred_element_type=jnp.float32) + b1_ref[...]
    h1 = jnp.tanh(z1)

    z2 = jnp.dot(h1.astype(jnp.bfloat16), w2_ref[...],
                 preferred_element_type=jnp.float32) + b2_ref[...]
    red = jnp.tanh(z2)                 # (tb, 256); lanes >= 192 are exactly 0

    z3 = jnp.dot(red.astype(jnp.bfloat16), w3_ref[...],
                 preferred_element_type=jnp.float32) + b3_ref[...]
    h3 = jnp.tanh(z3)

    z4 = jnp.dot(h3.astype(jnp.bfloat16), w4_ref[...],
                 preferred_element_type=jnp.float32) + b4_ref[...]

    # Store at logical widths: one lane-masked vst on the boundary vreg is far
    # cheaper than writing (and later slicing) 33% extra padded lanes in HBM.
    out_ref[...] = jnp.tanh(z4[:, :D_OUT]).astype(out_ref.dtype)
    red_ref[...] = red[:, :D_RED].astype(red_ref.dtype)


def pad_params(params):
    """Zero-pad weights/biases to 128-aligned MXU shapes; weights -> bf16,
    biases stay f32 (bias-add and tanh run in f32).

    Zero padding is load-bearing: padded weight rows/cols and padded biases
    are 0, so padded activation lanes are tanh(0) = 0 and never leak into the
    logical lanes that get stored.
    """
    shapes = {
        "w1": (P_IN, P_H1), "b1": (1, P_H1),
        "w2": (P_H1, P_RED), "b2": (1, P_RED),
        "w3": (P_RED, P_H2), "b3": (1, P_H2),
        "w4": (P_H2, P_OUT), "b4": (1, P_OUT),
    }
    padded = {}
    for name, pshape in shapes.items():
        v = params[name]
        dtype = jnp.bfloat16 if name.startswith("w") else jnp.float32
        buf = jnp.zeros(pshape, dtype)
        padded[name] = buf.at[: v.shape[0], : v.shape[1]].set(v.astype(dtype))
    return padded


def autoencoder_forward(x, params, *, tile_b=None, out_dtype=jnp.bfloat16):
    """x: (B, 385), f32 or bf16 (feeding bf16 halves the input DMA; the kernel
    casts anyway so numerics are identical).  params: unpadded dict (as from
    init_params).  Returns (reconstruction (B, 385), reduced_data (B, 192)) in
    `out_dtype`; pass jnp.float32 to keep full-precision output storage.
    """
    B, d_in = x.shape
    assert d_in == D_IN

    if tile_b is None:
        # Balanced tiles at 16-row granularity (bf16 sublane packing).  Keep
        # >= 2 grid steps so the "parallel" batch axis can spread across both
        # v7x TensorCores; cap the tile so VMEM stays well under the limits.
        steps = max(2, pl.cdiv(B, MAX_TILE_B))
        tile_b = _round_up(pl.cdiv(B, steps), 16)
    tile_b = max(16, _round_up(tile_b, 8))

    grid = (pl.cdiv(B, tile_b),)

    pp = pad_params(params)

    # Weights/biases use a constant index_map -> DMA'd once, stay resident in
    # VMEM across all grid steps.  (Default double-buffering costs ~0.8 MB of
    # spare VMEM; acceptable under the explicit 48 MiB budget.)
    def resident(shape):
        return pl.BlockSpec(shape, lambda i: (0, 0))

    in_specs = [
        # Unpadded x tile: full last dim (385) is a legal block width; lane
        # padding to 512 happens in VMEM inside the kernel (no extra HBM pass).
        pl.BlockSpec((tile_b, D_IN), lambda i: (i, 0)),
        resident((P_IN, P_H1)),  resident((1, P_H1)),     # enc1
        resident((P_H1, P_RED)), resident((1, P_RED)),    # enc2
        resident((P_RED, P_H2)), resident((1, P_H2)),     # dec1
        resident((P_H2, P_OUT)), resident((1, P_OUT)),    # dec2
    ]
    out_specs = [
        pl.BlockSpec((tile_b, D_OUT), lambda i: (i, 0)),
        pl.BlockSpec((tile_b, D_RED), lambda i: (i, 0)),
    ]
    out_shape = [
        jax.ShapeDtypeStruct((B, D_OUT), out_dtype),
        jax.ShapeDtypeStruct((B, D_RED), out_dtype),
    ]

    fn = pl.pallas_call(
        autoencoder_kernel,
        out_shape=out_shape,
        grid_spec=pltpu.PrefetchScalarGridSpec(
            num_scalar_prefetch=0,
            grid=grid,
            in_specs=in_specs,
            out_specs=out_specs,
        ),
        compiler_params=pltpu.CompilerParams(
            dimension_semantics=("parallel",),
            vmem_limit_bytes=VMEM_LIMIT_BYTES,
        ),
    )

    out, red = fn(
        x,
        pp["w1"], pp["b1"],
        pp["w2"], pp["b2"],
        pp["w3"], pp["b3"],
        pp["w4"], pp["b4"],
    )
    # Pallas masks the writeback of the partial final row-tile (rows >= B are
    # never written), so no wrapper-side padding or slicing passes are needed.
    return out, red


def init_params(key):
    """Deterministic init mimicking nn.Linear (uniform +- 1/sqrt(fan_in)).
    Weights stored transposed: (in_features, out_features), unpadded, f32."""
    dims = [(D_IN, D_H1), (D_H1, D_RED), (D_RED, D_H2), (D_H2, D_OUT)]
    params = {}
    keys = jax.random.split(key, 2 * len(dims))
    for idx, (fan_in, fan_out) in enumerate(dims):
        bound = 1.0 / jnp.sqrt(fan_in)
        w = jax.random.uniform(keys[2 * idx], (fan_in, fan_out),
                               minval=-bound, maxval=bound, dtype=jnp.float32)
        b = jax.random.uniform(keys[2 * idx + 1], (1, fan_out),
                               minval=-bound, maxval=bound, dtype=jnp.float32)
        params[f"w{idx + 1}"] = w
        params[f"b{idx + 1}"] = b
    return params


def reference_forward(x, params):
    """Pure-JAX f32 reference matching the PyTorch module semantics."""
    h1 = jnp.tanh(x @ params["w1"] + params["b1"])
    red = jnp.tanh(h1 @ params["w2"] + params["b2"])
    h3 = jnp.tanh(red @ params["w3"] + params["b3"])
    out = jnp.tanh(h3 @ params["w4"] + params["b4"])
    return out, red


if __name__ == "__main__":
    key = jax.random.PRNGKey(0)
    k_param, k_x = jax.random.split(key)

    params = init_params(k_param)
    batch = 16
    x = jax.random.normal(k_x, (batch, D_IN), dtype=jnp.float32)

    fwd = jax.jit(autoencoder_forward)
    out, reduced = fwd(x, params)
    out = jax.block_until_ready(out)
    reduced = jax.block_until_ready(reduced)

    ref_out, ref_red = reference_forward(x, params)
    assert out.shape == (batch, D_OUT)
    assert reduced.shape == (batch, D_RED)
    # bf16 MXU operands + bf16 output storage, f32 accumulation -> small drift.
    assert jnp.max(jnp.abs(out.astype(jnp.float32) - ref_out)) < 3e-2
    assert jnp.max(jnp.abs(reduced.astype(jnp.float32) - ref_red)) < 3e-2

    print("KERNEL_OK")
</pallas_src>

<mosaic_0001>
module attributes {stable_mosaic.version = 11 : i64} {
  func.func @autoencoder_kernel(%arg0: i32, %arg1: memref<16x385xf32, #tpu.memory_space<vmem>>, %arg2: memref<512x256xbf16, #tpu.memory_space<vmem>>, %arg3: memref<1x256xf32, #tpu.memory_space<vmem>>, %arg4: memref<256x256xbf16, #tpu.memory_space<vmem>>, %arg5: memref<1x256xf32, #tpu.memory_space<vmem>>, %arg6: memref<256x256xbf16, #tpu.memory_space<vmem>>, %arg7: memref<1x256xf32, #tpu.memory_space<vmem>>, %arg8: memref<256x512xbf16, #tpu.memory_space<vmem>>, %arg9: memref<1x512xf32, #tpu.memory_space<vmem>>, %arg10: memref<16x385xbf16, #tpu.memory_space<vmem>>, %arg11: memref<16x192xbf16, #tpu.memory_space<vmem>>) attributes {dimension_semantics = [#tpu.dimension_semantics<parallel>], iteration_bounds = array<i64: 1>, scalar_prefetch = 0 : i64, scratch_operands = 0 : i64, tpu.core_type = #tpu.core_type<tc>, window_params = [{transform_indices = @transform_0, window_bounds = array<i64: 16, 385>}, {pipeline_mode = #tpu.pipeline_mode<synchronous>, transform_indices = @transform_1, window_bounds = array<i64: 512, 256>}, {pipeline_mode = #tpu.pipeline_mode<synchronous>, transform_indices = @transform_2, window_bounds = array<i64: 1, 256>}, {pipeline_mode = #tpu.pipeline_mode<synchronous>, transform_indices = @transform_3, window_bounds = array<i64: 256, 256>}, {pipeline_mode = #tpu.pipeline_mode<synchronous>, transform_indices = @transform_4, window_bounds = array<i64: 1, 256>}, {pipeline_mode = #tpu.pipeline_mode<synchronous>, transform_indices = @transform_5, window_bounds = array<i64: 256, 256>}, {pipeline_mode = #tpu.pipeline_mode<synchronous>, transform_indices = @transform_6, window_bounds = array<i64: 1, 256>}, {pipeline_mode = #tpu.pipeline_mode<synchronous>, transform_indices = @transform_7, window_bounds = array<i64: 256, 512>}, {pipeline_mode = #tpu.pipeline_mode<synchronous>, transform_indices = @transform_8, window_bounds = array<i64: 1, 512>}, {transform_indices = @transform_9, window_bounds = array<i64: 16, 385>}, {transform_indices = @transform_10, window_bounds = array<i64: 16, 192>}]} {
    %c0 = arith.constant 0 : index
    %c0_0 = arith.constant 0 : index
    %0 = vector.load %arg1[%c0, %c0_0] : memref<16x385xf32, #tpu.memory_space<vmem>>, vector<16x385xf32>
    %1 = arith.truncf %0 : vector<16x385xf32> to vector<16x385xbf16>
    %cst = arith.constant 0.000000e+00 : bf16
    %2 = vector.broadcast %cst : bf16 to vector<16x127xbf16>
    %3 = tpu.concatenate %1, %2 in 1 : vector<16x385xbf16>, vector<16x127xbf16> -> vector<16x512xbf16>
    %c0_1 = arith.constant 0 : index
    %c0_2 = arith.constant 0 : index
    %4 = vector.load %arg2[%c0_1, %c0_2] : memref<512x256xbf16, #tpu.memory_space<vmem>>, vector<512x256xbf16>
    %cst_3 = arith.constant dense<0.000000e+00> : vector<16x256xf32>
    %5 = tpu.matmul %3, %4, %cst_3 {dimension_numbers = #tpu.dot_dimension_numbers<[1], [0], [0], [1], [0, 0, 1, 1], [], []>} : vector<16x512xbf16>, vector<512x256xbf16>, vector<16x256xf32> -> vector<16x256xf32>
    %c0_4 = arith.constant 0 : index
    %c0_5 = arith.constant 0 : index
    %6 = vector.load %arg3[%c0_4, %c0_5] : memref<1x256xf32, #tpu.memory_space<vmem>>, vector<1x256xf32>
    %7 = vector.broadcast %6 : vector<1x256xf32> to vector<16x256xf32>
    %8 = arith.addf %5, %7 : vector<16x256xf32>
    %9 = math.tanh %8 : vector<16x256xf32>
    %10 = arith.truncf %9 : vector<16x256xf32> to vector<16x256xbf16>
    %c0_6 = arith.constant 0 : index
    %c0_7 = arith.constant 0 : index
    %11 = vector.load %arg4[%c0_6, %c0_7] : memref<256x256xbf16, #tpu.memory_space<vmem>>, vector<256x256xbf16>
    %cst_8 = arith.constant dense<0.000000e+00> : vector<16x256xf32>
    %12 = tpu.matmul %10, %11, %cst_8 {dimension_numbers = #tpu.dot_dimension_numbers<[1], [0], [0], [1], [0, 0, 1, 1], [], []>} : vector<16x256xbf16>, vector<256x256xbf16>, vector<16x256xf32> -> vector<16x256xf32>
    %c0_9 = arith.constant 0 : index
    %c0_10 = arith.constant 0 : index
    %13 = vector.load %arg5[%c0_9, %c0_10] : memref<1x256xf32, #tpu.memory_space<vmem>>, vector<1x256xf32>
    %14 = vector.broadcast %13 : vector<1x256xf32> to vector<16x256xf32>
    %15 = arith.addf %12, %14 : vector<16x256xf32>
    %16 = math.tanh %15 : vector<16x256xf32>
    %17 = arith.truncf %16 : vector<16x256xf32> to vector<16x256xbf16>
    %c0_11 = arith.constant 0 : index
    %c0_12 = arith.constant 0 : index
    %18 = vector.load %arg6[%c0_11, %c0_12] : memref<256x256xbf16, #tpu.memory_space<vmem>>, vector<256x256xbf16>
    %cst_13 = arith.constant dense<0.000000e+00> : vector<16x256xf32>
    %19 = tpu.matmul %17, %18, %cst_13 {dimension_numbers = #tpu.dot_dimension_numbers<[1], [0], [0], [1], [0, 0, 1, 1], [], []>} : vector<16x256xbf16>, vector<256x256xbf16>, vector<16x256xf32> -> vector<16x256xf32>
    %c0_14 = arith.constant 0 : index
    %c0_15 = arith.constant 0 : index
    %20 = vector.load %arg7[%c0_14, %c0_15] : memref<1x256xf32, #tpu.memory_space<vmem>>, vector<1x256xf32>
    %21 = vector.broadcast %20 : vector<1x256xf32> to vector<16x256xf32>
    %22 = arith.addf %19, %21 : vector<16x256xf32>
    %23 = math.tanh %22 : vector<16x256xf32>
    %24 = arith.truncf %23 : vector<16x256xf32> to vector<16x256xbf16>
    %c0_16 = arith.constant 0 : index
    %c0_17 = arith.constant 0 : index
    %25 = vector.load %arg8[%c0_16, %c0_17] : memref<256x512xbf16, #tpu.memory_space<vmem>>, vector<256x512xbf16>
    %cst_18 = arith.constant dense<0.000000e+00> : vector<16x512xf32>
    %26 = tpu.matmul %24, %25, %cst_18 {dimension_numbers = #tpu.dot_dimension_numbers<[1], [0], [0], [1], [0, 0, 1, 1], [], []>} : vector<16x256xbf16>, vector<256x512xbf16>, vector<16x512xf32> -> vector<16x512xf32>
    %c0_19 = arith.constant 0 : index
    %c0_20 = arith.constant 0 : index
    %27 = vector.load %arg9[%c0_19, %c0_20] : memref<1x512xf32, #tpu.memory_space<vmem>>, vector<1x512xf32>
    %28 = vector.broadcast %27 : vector<1x512xf32> to vector<16x512xf32>
    %29 = arith.addf %26, %28 : vector<16x512xf32>
    %30 = vector.extract_strided_slice %29 {offsets = [0, 0], sizes = [16, 385], strides = [1, 1]} : vector<16x512xf32> to vector<16x385xf32>
    %31 = math.tanh %30 : vector<16x385xf32>
    %32 = arith.truncf %31 : vector<16x385xf32> to vector<16x385xbf16>
    %c0_21 = arith.constant 0 : index
    %c0_22 = arith.constant 0 : index
    %33 = vector.load %arg10[%c0_21, %c0_22] : memref<16x385xbf16, #tpu.memory_space<vmem>>, vector<16x385xbf16>
    tpu.vector_store %arg10[%c0_21, %c0_22], %32 {strides = array<i32>} : memref<16x385xbf16, #tpu.memory_space<vmem>>, vector<16x385xbf16>,
    %34 = vector.extract_strided_slice %16 {offsets = [0, 0], sizes = [16, 192], strides = [1, 1]} : vector<16x256xf32> to vector<16x192xf32>
    %35 = arith.truncf %34 : vector<16x192xf32> to vector<16x192xbf16>
    %c0_23 = arith.constant 0 : index
    %c0_24 = arith.constant 0 : index
    %36 = vector.load %arg11[%c0_23, %c0_24] : memref<16x192xbf16, #tpu.memory_space<vmem>>, vector<16x192xbf16>
    tpu.vector_store %arg11[%c0_23, %c0_24], %35 {strides = array<i32>} : memref<16x192xbf16, #tpu.memory_space<vmem>>, vector<16x192xbf16>,
    return
  }
  func.func @transform_0(%arg0: i32) -> (i32, i32) {
    %c0_i32 = arith.constant 0 : i32
    %c0_i32_0 = arith.constant 0 : i32
    return %arg0, %c0_i32 : i32, i32
  }
  func.func @transform_1(%arg0: i32) -> (i32, i32) {
    %c0_i32 = arith.constant 0 : i32
    %c0_i32_0 = arith.constant 0 : i32
    %c0_i32_1 = arith.constant 0 : i32
    return %c0_i32, %c0_i32_0 : i32, i32
  }
  func.func @transform_2(%arg0: i32) -> (i32, i32) {
    %c0_i32 = arith.constant 0 : i32
    %c0_i32_0 = arith.constant 0 : i32
    %c0_i32_1 = arith.constant 0 : i32
    return %c0_i32, %c0_i32_0 : i32, i32
  }
  func.func @transform_3(%arg0: i32) -> (i32, i32) {
    %c0_i32 = arith.constant 0 : i32
    %c0_i32_0 = arith.constant 0 : i32
    %c0_i32_1 = arith.constant 0 : i32
    return %c0_i32, %c0_i32_0 : i32, i32
  }
  func.func @transform_4(%arg0: i32) -> (i32, i32) {
    %c0_i32 = arith.constant 0 : i32
    %c0_i32_0 = arith.constant 0 : i32
    %c0_i32_1 = arith.constant 0 : i32
    return %c0_i32, %c0_i32_0 : i32, i32
  }
  func.func @transform_5(%arg0: i32) -> (i32, i32) {
    %c0_i32 = arith.constant 0 : i32
    %c0_i32_0 = arith.constant 0 : i32
    %c0_i32_1 = arith.constant 0 : i32
    return %c0_i32, %c0_i32_0 : i32, i32
  }
  func.func @transform_6(%arg0: i32) -> (i32, i32) {
    %c0_i32 = arith.constant 0 : i32
    %c0_i32_0 = arith.constant 0 : i32
    %c0_i32_1 = arith.constant 0 : i32
    return %c0_i32, %c0_i32_0 : i32, i32
  }
  func.func @transform_7(%arg0: i32) -> (i32, i32) {
    %c0_i32 = arith.constant 0 : i32
    %c0_i32_0 = arith.constant 0 : i32
    %c0_i32_1 = arith.constant 0 : i32
    return %c0_i32, %c0_i32_0 : i32, i32
  }
  func.func @transform_8(%arg0: i32) -> (i32, i32) {
    %c0_i32 = arith.constant 0 : i32
    %c0_i32_0 = arith.constant 0 : i32
    %c0_i32_1 = arith.constant 0 : i32
    return %c0_i32, %c0_i32_0 : i32, i32
  }
  func.func @transform_9(%arg0: i32) -> (i32, i32) {
    %c0_i32 = arith.constant 0 : i32
    %c0_i32_0 = arith.constant 0 : i32
    return %arg0, %c0_i32 : i32, i32
  }
  func.func @transform_10(%arg0: i32) -> (i32, i32) {
    %c0_i32 = arith.constant 0 : i32
    %c0_i32_0 = arith.constant 0 : i32
    return %arg0, %c0_i32 : i32, i32
  }
}

</mosaic_0001>

<bundles_post_ra>
// kernel: autoencoder_forward.1
= control target key start
LH: loop header
LB: loop body
LE: loop exit
PB: predicated region body
PF: predicated region fallthrough
CT: control target
= control target key end

     0   :  { %16 = vsyncpa [#allocation3], 0  ;;  %vm49_vm0 = vcmask 7168   ;;  %s2937_s0 = inlined_call_operand.vmem [shape: f32[16,385], index: 0, kind: input, shape index: {}]   ;;  %s2938_s1 = inlined_call_operand.vmem [shape: bf16[512,256], index: 1, kind: input, shape index: {}]   ;;  %s2939_s2 = inlined_call_operand.vmem [shape: f32[1,256], index: 2, kind: input, shape index: {}]   ;;  %s2940_s3 = inlined_call_operand.vmem [shape: bf16[256,256], index: 3, kind: input, shape index: {}]   ;;  %s2941_s4 = inlined_call_operand.vmem [shape: f32[1,256], index: 4, kind: input, shape index: {}]   ;;  %s2942_s5 = inlined_call_operand.vmem [shape: bf16[256,256], index: 5, kind: input, shape index: {}]   ;;  %s2943_s6 = inlined_call_operand.vmem [shape: f32[1,256], index: 6, kind: input, shape index: {}]   ;;  %s2944_s7 = inlined_call_operand.vmem [shape: bf16[256,512], index: 7, kind: input, shape index: {}]   ;;  %s2945_s8 = inlined_call_operand.vmem [shape: f32[1,512], index: 8, kind: input, shape index: {}]   ;;  %s2946_s9 = inlined_call_operand.hbm [shape: bf16[16,385], index: 9, kind: output, shape index: {0}]   ;;  %s2947_s10 = inlined_call_operand.hbm [shape: bf16[16,192], index: 10, kind: output, shape index: {1}]  }
   0x1   :  { %v1844_v0 = vld [vmem:[%s2938_s1 + $0x4] ss:$8 sps:$4 sm:$0xff]   ;;  %v1846_v1 = vld [vmem:[%s2938_s1] ss:$8 sps:$4 sm:$0xff]   ;;  %v1847_v2 = vld [vmem:[%s2938_s1 + $0x14] ss:$8 sps:$4 sm:$0xff]  }
   0x2   :  { %450 = vmatprep.subr.bf16.mxu0 %v1844_v0  ;;  %v1849_v3 = vld [vmem:[%s2938_s1 + $0x10] ss:$8 sps:$4 sm:$0xff]   ;;  %v1850_v4 = vld [vmem:[%s2938_s1 + $0x24] ss:$8 sps:$4 sm:$0xff]   ;;  %v1852_v5 = vld [vmem:[%s2938_s1 + $0x20] ss:$8 sps:$4 sm:$0xff]  }
   0x3   :  { %451 = vmatpush1.bf16.msra.mxu0 %v1846_v1  ;;  %v1853_v6 = vld [vmem:[%s2938_s1 + $0x34] ss:$8 sps:$4 sm:$0xff]   ;;  %v1855_v7 = vld [vmem:[%s2938_s1 + $0x30] ss:$8 sps:$4 sm:$0xff]   ;;  %v1856_v8 = vld [vmem:[%s2938_s1 + $0x44] ss:$8 sps:$4 sm:$0xff]  }
   0x4   :  { %452 = vmatprep.subr.bf16.mxu0 %v1847_v2  ;;  %v1858_v9 = vld [vmem:[%s2938_s1 + $0x40] ss:$8 sps:$4 sm:$0xff]   ;;  %v1859_v10 = vld [vmem:[%s2938_s1 + $0x54] ss:$8 sps:$4 sm:$0xff]   ;;  %v1861_v11 = vld [vmem:[%s2938_s1 + $0x50] ss:$8 sps:$4 sm:$0xff]  }
   0x5   :  { %v1862_v12 = vld [vmem:[%s2938_s1 + $0x64] ss:$8 sps:$4 sm:$0xff]   ;;  %v1864_v16 = vld [vmem:[%s2938_s1 + $0x60] ss:$8 sps:$4 sm:$0xff]   ;;  %v1865_v17 = vld [vmem:[%s2938_s1 + $0x74] ss:$8 sps:$4 sm:$0xff]  }
   0x6   :  { %v38_v13 = vld [vmem:[%s2937_s0 + $0x8] sm:$0xff]  ;;  %v1867_v18 = vld [vmem:[%s2938_s1 + $0x70] ss:$8 sps:$4 sm:$0xff]   ;;  %v1871_v21 = vld [vmem:[%s2938_s1 + $0x94] ss:$8 sps:$4 sm:$0xff]  }
   0x7   :  { %453 = vmatpush1.bf16.msra.mxu0 %v1849_v3  ;;  %v42_v14 = vld [vmem:[%s2937_s0 + $0x28] sm:$0xff]  ;;  %v1873_v22 = vld [vmem:[%s2938_s1 + $0x90] ss:$8 sps:$4 sm:$0xff]   ;;  %v1877_v25 = vld [vmem:[%s2938_s1 + $0xb4] ss:$8 sps:$4 sm:$0xff]  }
   0x8   :  { %454 = vmatprep.subr.bf16.mxu0 %v1850_v4  ;;  %v46_v15 = vpack.c.bf16 %v42_v14, %v38_v13  ;;  %v1868_v19 = vld [vmem:[%s2938_s1 + $0x84] ss:$8 sps:$4 sm:$0xff]   ;;  %v1870_v20 = vld [vmem:[%s2938_s1 + $0x80] ss:$8 sps:$4 sm:$0xff]   ;;  %v1879_v26 = vld [vmem:[%s2938_s1 + $0xb0] ss:$8 sps:$4 sm:$0xff]  }
   0x9   :  { %v1874_v23 = vld [vmem:[%s2938_s1 + $0xa4] ss:$8 sps:$4 sm:$0xff]   ;;  %v1876_v24 = vld [vmem:[%s2938_s1 + $0xa0] ss:$8 sps:$4 sm:$0xff]   ;;  %v1943_v31 = vld [vmem:[%s2940_s3 + $0x14] ss:$8 sps:$4 sm:$0xff]  }
   0xa   :  { %482 = vmatprep.mubr.bf16.mxu0 %v46_v15  ;;  %v1880_v27 = vld [vmem:[%s2938_s1 + $0xc4] ss:$8 sps:$4 sm:$0xff]   ;;  %v1942_v29 = vld [vmem:[%s2940_s3] ss:$8 sps:$4 sm:$0xff]   ;;  %v1883_v32 = vld [vmem:[%s2938_s1 + $0xd4] ss:$8 sps:$4 sm:$0xff]  }
   0xb   :  { %455 = vmatpush1.bf16.msra.mxu0 %v1852_v5  ;;  %v1940_v28 = vld [vmem:[%s2940_s3 + $0x4] ss:$8 sps:$4 sm:$0xff]   ;;  %v1882_v30 = vld [vmem:[%s2938_s1 + $0xc0] ss:$8 sps:$4 sm:$0xff]   ;;  %v1945_v33 = vld [vmem:[%s2940_s3 + $0x10] ss:$8 sps:$4 sm:$0xff]  }
   0xc   :  { %456 = vmatprep.subr.bf16.mxu0 %v1853_v6  ;;  %746 = vmatprep.subr.bf16.mxu1 %v1940_v28  ;;  %v1946_v34 = vld [vmem:[%s2940_s3 + $0x24] ss:$8 sps:$4 sm:$0xff]   ;;  %v1885_v35 = vld [vmem:[%s2938_s1 + $0xd0] ss:$8 sps:$4 sm:$0xff]   ;;  %v1948_v37 = vld [vmem:[%s2940_s3 + $0x20] ss:$8 sps:$4 sm:$0xff]  }
   0xd   :  { %747 = vmatpush1.bf16.msra.mxu1 %v1942_v29  ;;  %v1886_v36 = vld [vmem:[%s2938_s1 + $0xe4] ss:$8 sps:$4 sm:$0xff]   ;;  %v1949_v38 = vld [vmem:[%s2940_s3 + $0x34] ss:$8 sps:$4 sm:$0xff]   ;;  %v1888_v39 = vld [vmem:[%s2938_s1 + $0xe0] ss:$8 sps:$4 sm:$0xff]  }
   0xe   :  { %748 = vmatprep.subr.bf16.mxu1 %v1943_v31  ;;  %v1889_v40 = vld [vmem:[%s2938_s1 + $0xf4] ss:$8 sps:$4 sm:$0xff]   ;;  %v1891_v41 = vld [vmem:[%s2938_s1 + $0xf0] ss:$8 sps:$4 sm:$0xff]   ;;  %v37_v42 = vld [vmem:[%s2937_s0] sm:$0xff] }
   0xf   :  { %457 = vmatpush1.bf16.msra.mxu0 %v1855_v7  ;;  %v41_v43 = vld [vmem:[%s2937_s0 + $0x20] sm:$0xff]  ;;  %v1951_v44 = vld [vmem:[%s2940_s3 + $0x30] ss:$8 sps:$4 sm:$0xff]   ;;  %v1955_v50 = vld [vmem:[%s2940_s3 + $0x54] ss:$8 sps:$4 sm:$0xff]  }
  0x10   :  { %458 = vmatprep.subr.bf16.mxu0 %v1856_v8  ;;  %v1894_v45 = vld [vmem:[%s2938_s1 + $0x104] ss:$8 sps:$4 sm:$0xff]   ;;  %v40_v46 = vld [vmem:[%s2937_s0 + $0x18] sm:$0xff]  ;;  %v1954_v49 = vld [vmem:[%s2940_s3 + $0x40] ss:$8 sps:$4 sm:$0xff]   ;;  %v45_v52 = vpack.c.bf16 %v41_v43, %v37_v42 }
  0x11   :  { %749 = vmatpush1.bf16.msra.mxu1 %v1945_v33  ;;  %v1952_v47 = vld [vmem:[%s2940_s3 + $0x44] ss:$8 sps:$4 sm:$0xff]   ;;  %v44_v48 = vld [vmem:[%s2937_s0 + $0x38] sm:$0xff]  ;;  %v1892_v51 = vld [vmem:[%s2938_s1 + $0x100] ss:$8 sps:$4 sm:$0xff]  }
  0x12   :  { %750 = vmatprep.subr.bf16.mxu1 %v1946_v34  ;;  %v1897_v53 = vld [vmem:[%s2938_s1 + $0x114] ss:$8 sps:$4 sm:$0xff]   ;;  %v48_v54 = vpack.c.bf16 %v44_v48, %v40_v46  ;;  %v1957_v55 = vld [vmem:[%s2940_s3 + $0x50] ss:$8 sps:$4 sm:$0xff]   ;;  %v1958_v56 = vld [vmem:[%s2940_s3 + $0x64] ss:$8 sps:$4 sm:$0xff]  }
  0x13   :  { %459 = vmatpush1.bf16.msra.mxu0 %v1858_v9  ;;  %v1895_v57 = vld [vmem:[%s2938_s1 + $0x110] ss:$8 sps:$4 sm:$0xff]   ;;  %v1900_v58 = vld [vmem:[%s2938_s1 + $0x124] ss:$8 sps:$4 sm:$0xff]   ;;  %v1960_v59 = vld [vmem:[%s2940_s3 + $0x60] ss:$8 sps:$4 sm:$0xff]  }
  0x14   :  { %460 = vmatprep.subr.bf16.mxu0 %v1859_v10  ;;  %v1961_v60 = vld [vmem:[%s2940_s3 + $0x74] ss:$8 sps:$4 sm:$0xff]   ;;  %v1898_v61 = vld [vmem:[%s2938_s1 + $0x120] ss:$8 sps:$4 sm:$0xff]   ;;  %v1963_v63 = vld [vmem:[%s2940_s3 + $0x70] ss:$8 sps:$4 sm:$0xff]  }
  0x15   :  { %751 = vmatpush1.bf16.msra.mxu1 %v1948_v37  ;;  %v1903_v62 = vld [vmem:[%s2938_s1 + $0x134] ss:$8 sps:$4 sm:$0xff]   ;;  %v1964_v0 = vld [vmem:[%s2940_s3 + $0x84] ss:$8 sps:$4 sm:$0xff]   ;;  %v1901_v1 = vld [vmem:[%s2938_s1 + $0x130] ss:$8 sps:$4 sm:$0xff]  }
  0x16   :  { %752 = vmatprep.subr.bf16.mxu1 %v1949_v38  ;;  %v1906_v2 = vld [vmem:[%s2938_s1 + $0x144] ss:$8 sps:$4 sm:$0xff]   ;;  %v1966_v3 = vld [vmem:[%s2940_s3 + $0x80] ss:$8 sps:$4 sm:$0xff]   ;;  %v1967_v4 = vld [vmem:[%s2940_s3 + $0x94] ss:$8 sps:$4 sm:$0xff]  }
  0x17   :  { %461 = vmatpush1.bf16.msra.mxu0 %v1861_v11  ;;  %v1904_v5 = vld [vmem:[%s2938_s1 + $0x140] ss:$8 sps:$4 sm:$0xff]   ;;  %v1909_v6 = vld [vmem:[%s2938_s1 + $0x154] ss:$8 sps:$4 sm:$0xff]   ;;  %v1969_v7 = vld [vmem:[%s2940_s3 + $0x90] ss:$8 sps:$4 sm:$0xff]  }
  0x18   :  { %462 = vmatprep.subr.bf16.mxu0 %v1862_v12  ;;  %v1970_v8 = vld [vmem:[%s2940_s3 + $0xa4] ss:$8 sps:$4 sm:$0xff]   ;;  %v1907_v9 = vld [vmem:[%s2938_s1 + $0x150] ss:$8 sps:$4 sm:$0xff]   ;;  %v1972_v11 = vld [vmem:[%s2940_s3 + $0xa0] ss:$8 sps:$4 sm:$0xff]  }
  0x19   :  { %753 = vmatpush1.bf16.msra.mxu1 %v1951_v44  ;;  %v1912_v10 = vld [vmem:[%s2938_s1 + $0x164] ss:$8 sps:$4 sm:$0xff]   ;;  %v1910_v12 = vld [vmem:[%s2938_s1 + $0x160] ss:$8 sps:$4 sm:$0xff]   ;;  %v1915_v13 = vld [vmem:[%s2938_s1 + $0x174] ss:$8 sps:$4 sm:$0xff]  }
  0x1a   :  { %754 = vmatprep.subr.bf16.mxu1 %v1952_v47  ;;  %v1913_v14 = vld [vmem:[%s2938_s1 + $0x170] ss:$8 sps:$4 sm:$0xff]   ;;  %v1918_v15 = vld [vmem:[%s2938_s1 + $0x184] ss:$8 sps:$4 sm:$0xff]  }
  0x1b   :  { %463 = vmatpush1.bf16.msra.mxu0 %v1864_v16  ;;  %v1916_v16 = vld [vmem:[%s2938_s1 + $0x180] ss:$8 sps:$4 sm:$0xff]  }
  0x1c   :  { %464 = vmatprep.subr.bf16.mxu0 %v1865_v17 }
  0x1d   :  { %755 = vmatpush1.bf16.msra.mxu1 %v1954_v49 }
  0x1e   :  { %756 = vmatprep.subr.bf16.mxu1 %v1955_v50 }
  0x1f   :  { %465 = vmatpush1.bf16.msra.mxu0 %v1867_v18 }
  0x20   :  { %466 = vmatprep.subr.bf16.mxu0 %v1868_v19 }
  0x21   :  { %757 = vmatpush1.bf16.msra.mxu1 %v1957_v55 }
  0x22   :  { %758 = vmatprep.subr.bf16.mxu1 %v1958_v56 }
  0x23   :  { %467 = vmatpush1.bf16.msra.mxu0 %v1870_v20 }
  0x24   :  { %468 = vmatprep.subr.bf16.mxu0 %v1871_v21 }
  0x25   :  { %759 = vmatpush1.bf16.msra.mxu1 %v1960_v59 }
  0x26   :  { %760 = vmatprep.subr.bf16.mxu1 %v1961_v60 }
  0x27   :  { %469 = vmatpush1.bf16.msra.mxu0 %v1873_v22 }
  0x28   :  { %470 = vmatprep.subr.bf16.mxu0 %v1874_v23 }
  0x29   :  { %761 = vmatpush1.bf16.msra.mxu1 %v1963_v63 }
  0x2a   :  { %762 = vmatprep.subr.bf16.mxu1 %v1964_v0 }
  0x2b   :  { %471 = vmatpush1.bf16.msra.mxu0 %v1876_v24 }
  0x2c   :  { %472 = vmatprep.subr.bf16.mxu0 %v1877_v25 }
  0x2d   :  { %763 = vmatpush1.bf16.msra.mxu1 %v1966_v3 }
  0x2e   :  { %764 = vmatprep.subr.bf16.mxu1 %v1967_v4 }
  0x2f   :  { %473 = vmatpush1.bf16.msra.mxu0 %v1879_v26 }
  0x30   :  { %474 = vmatprep.subr.bf16.mxu0 %v1880_v27 }
  0x31   :  { %765 = vmatpush1.bf16.msra.mxu1 %v1969_v7 }
  0x32   :  { %766 = vmatprep.subr.bf16.mxu1 %v1970_v8 }
  0x33   :  { %475 = vmatpush1.bf16.msra.mxu0 %v1882_v30 }
  0x34   :  { %476 = vmatprep.subr.bf16.mxu0 %v1883_v32 }
  0x35   :  { %767 = vmatpush1.bf16.msra.mxu1 %v1972_v11 }
  0x37   :  { %477 = vmatpush1.bf16.msra.mxu0 %v1885_v35 }
  0x38   :  { %478 = vmatprep.subr.bf16.mxu0 %v1886_v36 }
  0x3b   :  { %479 = vmatpush1.bf16.msra.mxu0 %v1888_v39 }
  0x3c   :  { %480 = vmatprep.subr.bf16.mxu0 %v1889_v40 }
  0x3f   :  { %481 = vmatpush1.bf16.msra.mxu0 %v1891_v41 }
  0x40   :  { %493 = vmatprep.subr.bf16.mxu0 %v1894_v45 }
  0x42   :  { %483 = vmatmul.mubr.bf16.vlgmr.msra.gmra.mrb[0].mxu0 %v45_v52 }
  0x43   :  { %494 = vmatpush1.bf16.msra.mxu0 %v1892_v51  ;;  %1689 = vmatprep.mubr.msk.bf16.mxu0 %vm49_vm0, %v48_v54 }
  0x44   :  { %495 = vmatprep.subr.bf16.mxu0 %v1897_v53 }
  0x47   :  { %496 = vmatpush1.bf16.msra.mxu0 %v1895_v57 }
  0x48   :  { %497 = vmatprep.subr.bf16.mxu0 %v1900_v58 }
  0x4b   :  { %498 = vmatpush1.bf16.msra.mxu0 %v1898_v61 }
  0x4c   :  { %499 = vmatprep.subr.bf16.mxu0 %v1903_v62 }
  0x4f   :  { %500 = vmatpush1.bf16.msra.mxu0 %v1901_v1 }
  0x50   :  { %501 = vmatprep.subr.bf16.mxu0 %v1906_v2 }
  0x53   :  { %502 = vmatpush1.bf16.msra.mxu0 %v1904_v5 }
  0x54   :  { %503 = vmatprep.subr.bf16.mxu0 %v1909_v6 }
  0x57   :  { %504 = vmatpush1.bf16.msra.mxu0 %v1907_v9 }
  0x58   :  { %505 = vmatprep.subr.bf16.mxu0 %v1912_v10 }
  0x5b   :  { %506 = vmatpush1.bf16.msra.mxu0 %v1910_v12 }
  0x5c   :  { %507 = vmatprep.subr.bf16.mxu0 %v1915_v13 }
  0x5f   :  { %508 = vmatpush1.bf16.msra.mxu0 %v1913_v14 }
  0x60   :  { %17 = vsyncpa [#allocation5], 0  ;;  %509 = vmatprep.subr.bf16.mxu0 %v1918_v15  ;;  %v1921_v17 = vld [vmem:[%s2938_s1 + $0x194] ss:$8 sps:$4 sm:$0xff]   ;;  %v1919_v18 = vld [vmem:[%s2938_s1 + $0x190] ss:$8 sps:$4 sm:$0xff]   ;;  %v120_v45 = vlaneseq }
  0x61   :  { %v1924_v19 = vld [vmem:[%s2938_s1 + $0x1a4] ss:$8 sps:$4 sm:$0xff]   ;;  %v1922_v20 = vld [vmem:[%s2938_s1 + $0x1a0] ss:$8 sps:$4 sm:$0xff]   ;;  %v1927_v21 = vld [vmem:[%s2938_s1 + $0x1b4] ss:$8 sps:$4 sm:$0xff]  }
  0x62   :  { %v1925_v22 = vld [vmem:[%s2938_s1 + $0x1b0] ss:$8 sps:$4 sm:$0xff]   ;;  %v1930_v23 = vld [vmem:[%s2938_s1 + $0x1c4] ss:$8 sps:$4 sm:$0xff]   ;;  %v1928_v24 = vld [vmem:[%s2938_s1 + $0x1c0] ss:$8 sps:$4 sm:$0xff]  }
  0x63   :  { %510 = vmatpush1.bf16.msra.mxu0 %v1916_v16  ;;  %v1933_v25 = vld [vmem:[%s2938_s1 + $0x1d4] ss:$8 sps:$4 sm:$0xff]   ;;  %v1931_v26 = vld [vmem:[%s2938_s1 + $0x1d0] ss:$8 sps:$4 sm:$0xff]   ;;  %v1936_v27 = vld [vmem:[%s2938_s1 + $0x1e4] ss:$8 sps:$4 sm:$0xff]  }
  0x64   :  { %511 = vmatprep.subr.bf16.mxu0 %v1921_v17  ;;  %v1934_v28 = vld [vmem:[%s2938_s1 + $0x1e0] ss:$8 sps:$4 sm:$0xff]   ;;  %v1939_v29 = vld [vmem:[%s2938_s1 + $0x1f4] ss:$8 sps:$4 sm:$0xff]   ;;  %v1937_v30 = vld [vmem:[%s2938_s1 + $0x1f0] ss:$8 sps:$4 sm:$0xff]  }
  0x65   :  { %v39_v31 = vld [vmem:[%s2937_s0 + $0x10] sm:$0xff]  ;;  %v1976_v36 = vld [vmem:[%s2940_s3 + $0xc4] ss:$8 sps:$4 sm:$0xff]   ;;  %v1978_v37 = vld [vmem:[%s2940_s3 + $0xc0] ss:$8 sps:$4 sm:$0xff]   ;;  %v2596_v46 = vshrl.u32 %v120_v45, 7 }
  0x66   :  { %v43_v32 = vld [vmem:[%s2937_s0 + $0x30] sm:$0xff]  ;;  %v1982_v40 = vld [vmem:[%s2940_s3 + $0xe4] ss:$8 sps:$4 sm:$0xff]   ;;  %v1984_v41 = vld [vmem:[%s2940_s3 + $0xe0] ss:$8 sps:$4 sm:$0xff]   ;;  %vm1573_vm1 = vcmask 1043456  }
  0x67   :  { %512 = vmatpush1.bf16.msra.mxu0 %v1919_v18  ;;  %v47_v33 = vpack.c.bf16 %v43_v32, %v39_v31  ;;  %v1973_v34 = vld [vmem:[%s2940_s3 + $0xb4] ss:$8 sps:$4 sm:$0xff]   ;;  %v1975_v35 = vld [vmem:[%s2940_s3 + $0xb0] ss:$8 sps:$4 sm:$0xff]   ;;  %v1990_v44 = vld [vmem:[%s2942_s5 + $0x4] ss:$8 sps:$4 sm:$0xff]  }
  0x68   :  { %513 = vmatprep.subr.bf16.mxu0 %v1924_v19  ;;  %768 = vmatprep.subr.bf16.mxu1 %v1973_v34  ;;  %v1979_v38 = vld [vmem:[%s2940_s3 + $0xd4] ss:$8 sps:$4 sm:$0xff]   ;;  %v1981_v39 = vld [vmem:[%s2940_s3 + $0xd0] ss:$8 sps:$4 sm:$0xff]   ;;  %v2599_v47 = vsub.s32 0, %v2596_v46  ;;  %v2605_v49 = vsub.s32 1, %v2596_v46 }
  0x69   :  { %769 = vmatpush1.bf16.msra.mxu1 %v1975_v35  ;;  %v1985_v42 = vld [vmem:[%s2940_s3 + $0xf4] ss:$8 sps:$4 sm:$0xff]   ;;  %v1987_v43 = vld [vmem:[%s2940_s3 + $0xf0] ss:$8 sps:$4 sm:$0xff]   ;;  %v118_v48 = vld [vmem:[%s2939_s2] sm:$0x3] }
  0x6a   :  { %770 = vmatprep.subr.bf16.mxu1 %v1976_v36  ;;  %v123_v50 = vrot.slane %v118_v48, %v2599_v47  ;;  %v127_v51 = vrot.slane %v118_v48, %v2605_v49  ;;  %v1988_v2 = vld [vmem:[%s2942_s5] ss:$8 sps:$4 sm:$0xff]   ;;  %v1993_v3 = vld [vmem:[%s2942_s5 + $0x14] ss:$8 sps:$4 sm:$0xff]   ;;  %v1991_v4 = vld [vmem:[%s2942_s5 + $0x10] ss:$8 sps:$4 sm:$0xff]  }
  0x6b   :  { %514 = vmatpush1.bf16.msra.mxu0 %v1922_v20  ;;  %v1996_v5 = vld [vmem:[%s2942_s5 + $0x24] ss:$8 sps:$4 sm:$0xff]   ;;  %v1994_v6 = vld [vmem:[%s2942_s5 + $0x20] ss:$8 sps:$4 sm:$0xff]   ;;  %v1999_v7 = vld [vmem:[%s2942_s5 + $0x34] ss:$8 sps:$4 sm:$0xff]  }
  0x6c   :  { %515 = vmatprep.subr.bf16.mxu0 %v1927_v21  ;;  %v1997_v8 = vld [vmem:[%s2942_s5 + $0x30] ss:$8 sps:$4 sm:$0xff]   ;;  %v2002_v9 = vld [vmem:[%s2942_s5 + $0x44] ss:$8 sps:$4 sm:$0xff]   ;;  %v2000_v10 = vld [vmem:[%s2942_s5 + $0x40] ss:$8 sps:$4 sm:$0xff]  }
  0x6d   :  { %771 = vmatpush1.bf16.msra.mxu1 %v1978_v37  ;;  %v2005_v11 = vld [vmem:[%s2942_s5 + $0x54] ss:$8 sps:$4 sm:$0xff]   ;;  %v2003_v12 = vld [vmem:[%s2942_s5 + $0x50] ss:$8 sps:$4 sm:$0xff]   ;;  %v2008_v13 = vld [vmem:[%s2942_s5 + $0x64] ss:$8 sps:$4 sm:$0xff]  }
  0x6e   :  { %772 = vmatprep.subr.bf16.mxu1 %v1979_v38  ;;  %v2006_v14 = vld [vmem:[%s2942_s5 + $0x60] ss:$8 sps:$4 sm:$0xff]   ;;  %v2011_v15 = vld [vmem:[%s2942_s5 + $0x74] ss:$8 sps:$4 sm:$0xff]   ;;  %v2009_v16 = vld [vmem:[%s2942_s5 + $0x70] ss:$8 sps:$4 sm:$0xff]  }
  0x6f   :  { %516 = vmatpush1.bf16.msra.mxu0 %v1925_v22  ;;  %v2014_v17 = vld [vmem:[%s2942_s5 + $0x84] ss:$8 sps:$4 sm:$0xff]   ;;  %v2012_v18 = vld [vmem:[%s2942_s5 + $0x80] ss:$8 sps:$4 sm:$0xff]   ;;  %v2017_v19 = vld [vmem:[%s2942_s5 + $0x94] ss:$8 sps:$4 sm:$0xff]  }
  0x70   :  { %517 = vmatprep.subr.bf16.mxu0 %v1930_v23  ;;  %v2015_v20 = vld [vmem:[%s2942_s5 + $0x90] ss:$8 sps:$4 sm:$0xff]   ;;  %v2020_v21 = vld [vmem:[%s2942_s5 + $0xa4] ss:$8 sps:$4 sm:$0xff]   ;;  %v2018_v22 = vld [vmem:[%s2942_s5 + $0xa0] ss:$8 sps:$4 sm:$0xff]  }
  0x71   :  { %773 = vmatpush1.bf16.msra.mxu1 %v1981_v39  ;;  %v2023_v23 = vld [vmem:[%s2942_s5 + $0xb4] ss:$8 sps:$4 sm:$0xff]   ;;  %v2033_v32 = vld [vmem:[%s2942_s5 + $0xf0] ss:$8 sps:$4 sm:$0xff]   ;;  %vm1589_vm2 = vcmask 523268  }
  0x72   :  { %774 = vmatprep.subr.bf16.mxu1 %v1982_v40  ;;  %v2035_v31 = vld [vmem:[%s2942_s5 + $0xf4] ss:$8 sps:$4 sm:$0xff]   ;;  %v2042_v37 = vld [vmem:[%s2944_s7 + $0x20] ss:$16 sps:$4 sm:$0xff]   ;;  %vm1590_vm3 = vmor %vm1589_vm2, %vm1573_vm1 }
  0x73   :  { %518 = vmatpush1.bf16.msra.mxu0 %v1928_v24  ;;  %v2021_v24 = vld [vmem:[%s2942_s5 + $0xb0] ss:$8 sps:$4 sm:$0xff]   ;;  %v2038_v34 = vld [vmem:[%s2944_s7 + $0x4] ss:$16 sps:$4 sm:$0xff]   ;;  %v2041_v35 = vld [vmem:[%s2944_s7 + $0xc] ss:$16 sps:$4 sm:$0xff]  }
  0x74   :  { %519 = vmatprep.subr.bf16.mxu0 %v1933_v25  ;;  %v2026_v25 = vld [vmem:[%s2942_s5 + $0xc4] ss:$8 sps:$4 sm:$0xff]   ;;  %v2048_v39 = vld [vmem:[%s2944_s7 + $0x40] ss:$16 sps:$4 sm:$0xff]  }
  0x75   :  { %775 = vmatpush1.bf16.msra.mxu1 %v1984_v41  ;;  %v2044_v36 = vld [vmem:[%s2944_s7 + $0x24] ss:$16 sps:$4 sm:$0xff]   ;;  %v2054_v41 = vld [vmem:[%s2944_s7 + $0x60] ss:$16 sps:$4 sm:$0xff]  }
  0x76   :  { %776 = vmatprep.subr.bf16.mxu1 %v1985_v42  ;;  %v2050_v38 = vld [vmem:[%s2944_s7 + $0x44] ss:$16 sps:$4 sm:$0xff]   ;;  %v2066_v45 = vld [vmem:[%s2944_s7 + $0xa0] ss:$16 sps:$4 sm:$0xff]  }
  0x77   :  { %520 = vmatpush1.bf16.msra.mxu0 %v1931_v26  ;;  %v2024_v26 = vld [vmem:[%s2942_s5 + $0xc0] ss:$8 sps:$4 sm:$0xff]   ;;  %v2056_v40 = vld [vmem:[%s2944_s7 + $0x64] ss:$16 sps:$4 sm:$0xff]  }
  0x78   :  { %521 = vmatprep.subr.bf16.mxu0 %v1936_v27  ;;  %v2027_v27 = vld [vmem:[%s2942_s5 + $0xd0] ss:$8 sps:$4 sm:$0xff]   ;;  %v2062_v42 = vld [vmem:[%s2944_s7 + $0x84] ss:$16 sps:$4 sm:$0xff]  }
  0x79   :  { %777 = vmatpush1.bf16.msra.mxu1 %v1987_v43  ;;  %v2060_v43 = vld [vmem:[%s2944_s7 + $0x80] ss:$16 sps:$4 sm:$0xff]   ;;  %v2074_v48 = vld [vmem:[%s2944_s7 + $0xc4] ss:$16 sps:$4 sm:$0xff]  }
  0x7a   :  { %999 = vmatprep.subr.bf16.mxu1 %v1990_v44  ;;  %v2068_v44 = vld [vmem:[%s2944_s7 + $0xa4] ss:$16 sps:$4 sm:$0xff]  }
  0x7b   :  { %522 = vmatpush1.bf16.msra.mxu0 %v1934_v28  ;;  %v2029_v28 = vld [vmem:[%s2942_s5 + $0xd4] ss:$8 sps:$4 sm:$0xff]  }
  0x7c   :  { %523 = vmatprep.subr.bf16.mxu0 %v1939_v29  ;;  %v2032_v29 = vld [vmem:[%s2942_s5 + $0xe4] ss:$8 sps:$4 sm:$0xff]  }
  0x7f   :  { %524 = vmatpush1.bf16.msra.mxu0 %v1937_v30  ;;  %v2030_v30 = vld [vmem:[%s2942_s5 + $0xe0] ss:$8 sps:$4 sm:$0xff]  }
  0x80   :  { %1454 = vmatprep.subr.bf16.mxu0 %v2038_v34  ;;  %v2099_v34 = vld [vmem:[%s2944_s7 + $0x148] ss:$16 sps:$4 sm:$0xff]  }
  0x82   :  { %526 = vmatmul.mubr.bf16.vlgmr.msra.gmra.mrb[0].mxu0 %v47_v33  ;;  %v2036_v33 = vld [vmem:[%s2944_s7] ss:$16 sps:$4 sm:$0xff]  }
  0x83   :  { %1455 = vmatpush1.bf16.msra.mxu0 %v2036_v33  ;;  %v2101_v33 = vld [vmem:[%s2944_s7 + $0x14c] ss:$16 sps:$4 sm:$0xff]  }
  0x84   :  { %1456 = vmatprep.subr.bf16.mxu0 %v2044_v36  ;;  %v2107_v36 = vld [vmem:[%s2944_s7 + $0x16c] ss:$16 sps:$4 sm:$0xff]  }
  0x87   :  { %1457 = vmatpush1.bf16.msra.mxu0 %v2042_v37  ;;  %v2102_v37 = vld [vmem:[%s2944_s7 + $0x160] ss:$16 sps:$4 sm:$0xff]  }
  0x88   :  { %1458 = vmatprep.subr.bf16.mxu0 %v2050_v38  ;;  %v2105_v38 = vld [vmem:[%s2944_s7 + $0x168] ss:$16 sps:$4 sm:$0xff]  }
  0x8b   :  { %1459 = vmatpush1.bf16.msra.mxu0 %v2048_v39  ;;  %v2110_v39 = vld [vmem:[%s2944_s7 + $0x184] ss:$16 sps:$4 sm:$0xff]  }
  0x8c   :  { %1460 = vmatprep.subr.bf16.mxu0 %v2056_v40  ;;  %v2113_v40 = vld [vmem:[%s2944_s7 + $0x18c] ss:$16 sps:$4 sm:$0xff]  }
  0x8f   :  { %1461 = vmatpush1.bf16.msra.mxu0 %v2054_v41  ;;  %v2108_v41 = vld [vmem:[%s2944_s7 + $0x180] ss:$16 sps:$4 sm:$0xff]  }
  0x90   :  { %1462 = vmatprep.subr.bf16.mxu0 %v2062_v42  ;;  %v2111_v42 = vld [vmem:[%s2944_s7 + $0x188] ss:$16 sps:$4 sm:$0xff]  }
  0x93   :  { %1463 = vmatpush1.bf16.msra.mxu0 %v2060_v43  ;;  %v2114_v43 = vld [vmem:[%s2944_s7 + $0x1a0] ss:$16 sps:$4 sm:$0xff]  }
  0x94   :  { %1464 = vmatprep.subr.bf16.mxu0 %v2068_v44  ;;  %v2116_v44 = vld [vmem:[%s2944_s7 + $0x1a4] ss:$16 sps:$4 sm:$0xff]  }
  0x97   :  { %1465 = vmatpush1.bf16.msra.mxu0 %v2066_v45  ;;  %v2117_v45 = vld [vmem:[%s2944_s7 + $0x1a8] ss:$16 sps:$4 sm:$0xff]  }
  0x98   :  { %1466 = vmatprep.subr.bf16.mxu0 %v2074_v48  ;;  %v2119_v48 = vld [vmem:[%s2944_s7 + $0x1ac] ss:$16 sps:$4 sm:$0xff]  }
 0x155   :  { %v527_v52 = vpop.f32.mrb[0].mxu0 }
 0x156   :  { %v1830_v53 = vadd.f32 %v527_v52, %v123_v50  ;;  %v529_v54 = vpop.f32.mrb[1].mxu0  ;;  %v2078_v52 = vld [vmem:[%s2944_s7 + $0xe0] ss:$16 sps:$4 sm:$0xff]  }
 0x157   :  { %v1831_v55 = vadd.f32 %v529_v54, %v127_v51  ;;  %v531_v56 = vpop.f32.mrb[2].mxu0  ;;  %v2084_v54 = vld [vmem:[%s2944_s7 + $0x100] ss:$16 sps:$4 sm:$0xff]  }
 0x158   :  { %2132 = vtanh.f32 %v1830_v53  ;;  %v1832_v57 = vadd.f32 %v531_v56, %v123_v50  ;;  %v533_v58 = vpop.f32.mrb[3].mxu0  ;;  %v2072_v50 = vld [vmem:[%s2944_s7 + $0xc0] ss:$16 sps:$4 sm:$0xff]   ;;  %v2086_v53 = vld [vmem:[%s2944_s7 + $0x104] ss:$16 sps:$4 sm:$0xff]  }
 0x159   :  { %2134 = vtanh.f32 %v1831_v55  ;;  %v1833_v59 = vadd.f32 %v533_v58, %v127_v51  ;;  %v2080_v51 = vld [vmem:[%s2944_s7 + $0xe4] ss:$16 sps:$4 sm:$0xff]   ;;  %1467 = vmatpush1.bf16.msra.mxu0 %v2072_v50  ;;  %v2090_v56 = vld [vmem:[%s2944_s7 + $0x120] ss:$16 sps:$4 sm:$0xff]  }
 0x15a   :  { %2136 = vtanh.f32 %v1832_v57  ;;  %1468 = vmatprep.subr.bf16.mxu0 %v2080_v51  ;;  %v2092_v55 = vld [vmem:[%s2944_s7 + $0x124] ss:$16 sps:$4 sm:$0xff]   ;;  %v2096_v58 = vld [vmem:[%s2944_s7 + $0x140] ss:$16 sps:$4 sm:$0xff]   ;;  %v2125_v51 = vld [vmem:[%s2944_s7 + $0x1cc] ss:$16 sps:$4 sm:$0xff]  }
 0x15b   :  { %2138 = vtanh.f32 %v1833_v59  ;;  %v2098_v57 = vld [vmem:[%s2944_s7 + $0x144] ss:$16 sps:$4 sm:$0xff]   ;;  %v574_v59 = vld [vmem:[%s2941_s4] sm:$0x3] }
 0x15c   :  { %v2122_v50 = vld [vmem:[%s2944_s7 + $0x1c4] ss:$16 sps:$4 sm:$0xff]  }
 0x15d   :  { %1469 = vmatpush1.bf16.msra.mxu0 %v2078_v52  ;;  %v2120_v52 = vld [vmem:[%s2944_s7 + $0x1c0] ss:$16 sps:$4 sm:$0xff]  }
 0x15e   :  { %1470 = vmatprep.subr.bf16.mxu0 %v2086_v53  ;;  %v2123_v53 = vld [vmem:[%s2944_s7 + $0x1c8] ss:$16 sps:$4 sm:$0xff]  }
 0x161   :  { %1471 = vmatpush1.bf16.msra.mxu0 %v2084_v54  ;;  %v2128_v54 = vld [vmem:[%s2944_s7 + $0x1e4] ss:$16 sps:$4 sm:$0xff]  }
 0x162   :  { %v2133_v60 = vpop.eup %2132  ;;  %1472 = vmatprep.subr.bf16.mxu0 %v2092_v55  ;;  %v2131_v55 = vld [vmem:[%s2944_s7 + $0x1ec] ss:$16 sps:$4 sm:$0xff]  }
 0x163   :  { %v2135_v61 = vpop.eup %2134 }
 0x164   :  { %v2137_v62 = vpop.eup %2136 }
 0x165   :  { %v2139_v63 = vpop.eup %2138  ;;  %v540_v0 = vpack.c.bf16 %v2137_v62, %v2133_v60  ;;  %1473 = vmatpush1.bf16.msra.mxu0 %v2090_v56  ;;  %v579_v60 = vrot.slane %v574_v59, %v2599_v47  ;;  %v2126_v56 = vld [vmem:[%s2944_s7 + $0x1e0] ss:$16 sps:$4 sm:$0xff]  }
 0x166   :  { %v541_v1 = vpack.c.bf16 %v2139_v63, %v2135_v61  ;;  %1474 = vmatprep.subr.bf16.mxu0 %v2098_v57  ;;  %v583_v61 = vrot.slane %v574_v59, %v2605_v49  ;;  %v2129_v57 = vld [vmem:[%s2944_s7 + $0x1e8] ss:$16 sps:$4 sm:$0xff]  }
 0x168   :  { %778 = vmatprep.mubr.bf16.mxu1 %v541_v1 }
 0x169   :  { %779 = vmatmul.mubr.bf16.vlgmr.msra.gmra.mrb[0].mxu1 %v540_v0  ;;  %1475 = vmatpush1.bf16.msra.mxu0 %v2096_v58  ;;  %v827_v58 = vld [vmem:[%s2943_s6] sm:$0x3]  ;;  %s2220_s6 = smov [#allocation4]  }
 0x16a   :  { %1000 = vmatpush1.bf16.msra.mxu1 %v1988_v2  ;;  %v832_v59 = vrot.slane %v827_v58, %v2599_v47 }
 0x16b   :  { %1001 = vmatprep.subr.bf16.mxu1 %v1993_v3 }
 0x16e   :  { %1002 = vmatpush1.bf16.msra.mxu1 %v1991_v4 }
 0x16f   :  { %1003 = vmatprep.subr.bf16.mxu1 %v1996_v5 }
 0x172   :  { %1004 = vmatpush1.bf16.msra.mxu1 %v1994_v6 }
 0x173   :  { %1005 = vmatprep.subr.bf16.mxu1 %v1999_v7 }
 0x176   :  { %1006 = vmatpush1.bf16.msra.mxu1 %v1997_v8 }
 0x177   :  { %1007 = vmatprep.subr.bf16.mxu1 %v2002_v9 }
 0x17a   :  { %1008 = vmatpush1.bf16.msra.mxu1 %v2000_v10 }
 0x17b   :  { %1009 = vmatprep.subr.bf16.mxu1 %v2005_v11 }
 0x17e   :  { %1010 = vmatpush1.bf16.msra.mxu1 %v2003_v12 }
 0x17f   :  { %1011 = vmatprep.subr.bf16.mxu1 %v2008_v13  ;;  %v2039_v13 = vld [vmem:[%s2944_s7 + $0x8] ss:$16 sps:$4 sm:$0xff]  }
 0x182   :  { %1012 = vmatpush1.bf16.msra.mxu1 %v2006_v14 }
 0x183   :  { %1013 = vmatprep.subr.bf16.mxu1 %v2011_v15  ;;  %v2047_v15 = vld [vmem:[%s2944_s7 + $0x2c] ss:$16 sps:$4 sm:$0xff]  }
 0x186   :  { %1014 = vmatpush1.bf16.msra.mxu1 %v2009_v16  ;;  %v2045_v16 = vld [vmem:[%s2944_s7 + $0x28] ss:$16 sps:$4 sm:$0xff]  }
 0x187   :  { %1015 = vmatprep.subr.bf16.mxu1 %v2014_v17  ;;  %v2053_v17 = vld [vmem:[%s2944_s7 + $0x4c] ss:$16 sps:$4 sm:$0xff]  }
 0x18a   :  { %1016 = vmatpush1.bf16.msra.mxu1 %v2012_v18  ;;  %v2051_v18 = vld [vmem:[%s2944_s7 + $0x48] ss:$16 sps:$4 sm:$0xff]  }
 0x18b   :  { %1017 = vmatprep.subr.bf16.mxu1 %v2017_v19  ;;  %v2059_v19 = vld [vmem:[%s2944_s7 + $0x6c] ss:$16 sps:$4 sm:$0xff]  }
 0x18e   :  { %1018 = vmatpush1.bf16.msra.mxu1 %v2015_v20  ;;  %v2057_v20 = vld [vmem:[%s2944_s7 + $0x68] ss:$16 sps:$4 sm:$0xff]  }
 0x18f   :  { %1019 = vmatprep.subr.bf16.mxu1 %v2020_v21  ;;  %v2065_v21 = vld [vmem:[%s2944_s7 + $0x8c] ss:$16 sps:$4 sm:$0xff]  }
 0x192   :  { %1020 = vmatpush1.bf16.msra.mxu1 %v2018_v22  ;;  %v2063_v22 = vld [vmem:[%s2944_s7 + $0x88] ss:$16 sps:$4 sm:$0xff]  }
 0x193   :  { %1021 = vmatprep.subr.bf16.mxu1 %v2023_v23  ;;  %v2071_v23 = vld [vmem:[%s2944_s7 + $0xac] ss:$16 sps:$4 sm:$0xff]  }
 0x196   :  { %1022 = vmatpush1.bf16.msra.mxu1 %v2021_v24  ;;  %v2069_v24 = vld [vmem:[%s2944_s7 + $0xa8] ss:$16 sps:$4 sm:$0xff]  }
 0x197   :  { %1023 = vmatprep.subr.bf16.mxu1 %v2026_v25  ;;  %v2077_v25 = vld [vmem:[%s2944_s7 + $0xcc] ss:$16 sps:$4 sm:$0xff]  }
 0x19a   :  { %1024 = vmatpush1.bf16.msra.mxu1 %v2024_v26  ;;  %v2075_v26 = vld [vmem:[%s2944_s7 + $0xc8] ss:$16 sps:$4 sm:$0xff]  }
 0x19b   :  { %1025 = vmatprep.subr.bf16.mxu1 %v2029_v28  ;;  %v2081_v28 = vld [vmem:[%s2944_s7 + $0xe8] ss:$16 sps:$4 sm:$0xff]  }
 0x19e   :  { %1026 = vmatpush1.bf16.msra.mxu1 %v2027_v27  ;;  %v2083_v27 = vld [vmem:[%s2944_s7 + $0xec] ss:$16 sps:$4 sm:$0xff]  }
 0x19f   :  { %1027 = vmatprep.subr.bf16.mxu1 %v2032_v29  ;;  %v2089_v29 = vld [vmem:[%s2944_s7 + $0x10c] ss:$16 sps:$4 sm:$0xff]  }
 0x1a2   :  { %1028 = vmatpush1.bf16.msra.mxu1 %v2030_v30  ;;  %v2087_v30 = vld [vmem:[%s2944_s7 + $0x108] ss:$16 sps:$4 sm:$0xff]  }
 0x1a3   :  { %1029 = vmatprep.subr.bf16.mxu1 %v2035_v31  ;;  %v2095_v31 = vld [vmem:[%s2944_s7 + $0x12c] ss:$16 sps:$4 sm:$0xff]  }
 0x1a6   :  { %1030 = vmatpush1.bf16.msra.mxu1 %v2033_v32  ;;  %v2093_v32 = vld [vmem:[%s2944_s7 + $0x128] ss:$16 sps:$4 sm:$0xff]  }
 0x1a7   :  { %1497 = vmatprep.subr.bf16.mxu1 %v2041_v35  ;;  %v2104_v35 = vld [vmem:[%s2944_s7 + $0x164] ss:$16 sps:$4 sm:$0xff]   ;;  %s1610_s7 = sshll.u32 %s2220_s6, 4  ;;  %s1611_s7 = int_to_ptr.vmem [resolvable:$true] %s1610_s7 }
 0x1a8   :  { %1476 = vmatprep.subr.bf16.mxu0 %v2104_v35  ;;  %s2172_s16 = scalar_lea.vmem %s1611_s7, 256  ;;  %p2177_p1 = scmp.lt.s32.totalorder %s1611_s7, %s1611_s7 }
 0x1a9   :  { %1477 = vmatpush1.bf16.msra.mxu0 %v2102_v37  ;;  %p2173_p0 = scmp.ne.s32.totalorder %s1611_s7, %s2172_s16  ;;  %p2178_p2 = scmp.lt.s32.totalorder %s2172_s16, %s2172_s16 }
 0x1aa   :  { %1478 = vmatprep.subr.bf16.mxu0 %v2110_v39 }
 0x1ab   :  { %p2179_p3 = por %p2178_p2, %p2177_p1 }
 0x1ad   :  { %1479 = vmatpush1.bf16.msra.mxu0 %v2108_v41  ;;  %p2180_p4 = pnand %p2179_p3, %p2173_p0 }
 0x1ae   :  { %1480 = vmatprep.subr.bf16.mxu0 %v2116_v44 }
 0x1b1   :  { %1481 = vmatpush1.bf16.msra.mxu0 %v2114_v43 }
 0x1b2   :  { %1482 = vmatprep.subr.bf16.mxu0 %v2122_v50 }
 0x1b5   :  { %1483 = vmatpush1.bf16.msra.mxu0 %v2120_v52 }
 0x1b6   :  { %1484 = vmatprep.subr.bf16.mxu0 %v2128_v54 }
 0x1b9   :  { %1485 = vmatpush1.bf16.msra.mxu0 %v2126_v56 }
 0x23c   :  { %v780_v62 = vpop.f32.mrb[0].mxu1 }
 0x23d   :  { %v781_v63 = vadd.f32 %v780_v62, %v579_v60  ;;  %v782_v0 = vpop.f32.mrb[1].mxu1 }
 0x23e   :  { %v783_v1 = vadd.f32 %v782_v0, %v583_v61  ;;  %v784_v2 = vpop.f32.mrb[2].mxu1 }
 0x23f   :  { %2140 = vtanh.f32 %v781_v63  ;;  %v785_v3 = vadd.f32 %v784_v2, %v579_v60  ;;  %v786_v4 = vpop.f32.mrb[3].mxu1  ;;  %v836_v60 = vrot.slane %v827_v58, %v2605_v49 }
 0x240   :  { %2142 = vtanh.f32 %v783_v1  ;;  %v787_v5 = vadd.f32 %v786_v4, %v583_v61 }
 0x241   :  { %2144 = vtanh.f32 %v785_v3 }
 0x242   :  { %2146 = vtanh.f32 %v787_v5 }
 0x249   :  { %v2141_v6 = vpop.eup %2140 }
 0x24a   :  { %v2143_v7 = vpop.eup %2142 }
 0x24b   :  { %v2145_v8 = vpop.eup %2144  ;;  %v1828_v9 = vpack.c.bf16 %v2143_v7, %v2141_v6 }
 0x24c   :  { %v2147_v10 = vpop.eup %2146  ;;  %v793_v11 = vpack.c.bf16 %v2145_v8, %v2141_v6 }
 0x24d   :  { %v794_v12 = vpack.c.bf16 %v2147_v10, %v2143_v7  ;;  %v1829_v14 = vpack.c.bf16 %v2147_v10, %v2145_v8  ;;  %1591 = vst.msk [vmem:[#allocation4] sm:$0xff] %vm1590_vm3, %v1828_v9 }
 0x24f   :  { %1031 = vmatprep.mubr.bf16.mxu1 %v794_v12  ;;  %1592 = vst.msk [vmem:[#allocation4 + $0x8] sm:$0xff] %vm1590_vm3, %v1829_v14 }
 0x250   :  { %1032 = vmatmul.mubr.bf16.vlgmr.msra.gmra.mrb[4].mxu1 %v793_v11 }
 0x251   :  { %1498 = vmatpush1.bf16.msra.mxu1 %v2039_v13 }
 0x252   :  { %1499 = vmatprep.subr.bf16.mxu1 %v2047_v15 }
 0x255   :  { %1500 = vmatpush1.bf16.msra.mxu1 %v2045_v16 }
 0x256   :  { %1501 = vmatprep.subr.bf16.mxu1 %v2053_v17 }
 0x259   :  { %1502 = vmatpush1.bf16.msra.mxu1 %v2051_v18 }
 0x25a   :  { %1503 = vmatprep.subr.bf16.mxu1 %v2059_v19 }
 0x25d   :  { %1504 = vmatpush1.bf16.msra.mxu1 %v2057_v20 }
 0x25e   :  { %1505 = vmatprep.subr.bf16.mxu1 %v2065_v21 }
 0x261   :  { %1506 = vmatpush1.bf16.msra.mxu1 %v2063_v22 }
 0x262   :  { %1507 = vmatprep.subr.bf16.mxu1 %v2071_v23 }
 0x265   :  { %1508 = vmatpush1.bf16.msra.mxu1 %v2069_v24 }
 0x266   :  { %1509 = vmatprep.subr.bf16.mxu1 %v2077_v25 }
 0x269   :  { %1510 = vmatpush1.bf16.msra.mxu1 %v2075_v26 }
 0x26a   :  { %1511 = vmatprep.subr.bf16.mxu1 %v2083_v27 }
 0x26d   :  { %1512 = vmatpush1.bf16.msra.mxu1 %v2081_v28 }
 0x26e   :  { %1513 = vmatprep.subr.bf16.mxu1 %v2089_v29 }
 0x271   :  { %1514 = vmatpush1.bf16.msra.mxu1 %v2087_v30 }
 0x272   :  { %1515 = vmatprep.subr.bf16.mxu1 %v2095_v31 }
 0x275   :  { %1516 = vmatpush1.bf16.msra.mxu1 %v2093_v32 }
 0x276   :  { %1517 = vmatprep.subr.bf16.mxu1 %v2101_v33 }
 0x279   :  { %1518 = vmatpush1.bf16.msra.mxu1 %v2099_v34 }
 0x27a   :  { %1519 = vmatprep.subr.bf16.mxu1 %v2107_v36 }
 0x27d   :  { %1520 = vmatpush1.bf16.msra.mxu1 %v2105_v38 }
 0x27e   :  { %1521 = vmatprep.subr.bf16.mxu1 %v2113_v40 }
 0x281   :  { %1522 = vmatpush1.bf16.msra.mxu1 %v2111_v42 }
 0x282   :  { %1523 = vmatprep.subr.bf16.mxu1 %v2119_v48 }
 0x285   :  { %1524 = vmatpush1.bf16.msra.mxu1 %v2117_v45 }
 0x286   :  { %1525 = vmatprep.subr.bf16.mxu1 %v2125_v51 }
 0x289   :  { %1526 = vmatpush1.bf16.msra.mxu1 %v2123_v53 }
 0x28a   :  { %1527 = vmatprep.subr.bf16.mxu1 %v2131_v55 }
 0x28d   :  { %1528 = vmatpush1.bf16.msra.mxu1 %v2129_v57 }
 0x323   :  { %v1033_v61 = vpop.f32.mrb[4].mxu1 }
 0x324   :  { %v1034_v62 = vadd.f32 %v1033_v61, %v832_v59  ;;  %v1035_v63 = vpop.f32.mrb[5].mxu1 }
 0x325   :  { %v1036_v0 = vadd.f32 %v1035_v63, %v836_v60  ;;  %v1037_v1 = vpop.f32.mrb[6].mxu1 }
 0x326   :  { %2148 = vtanh.f32 %v1034_v62  ;;  %v1038_v2 = vadd.f32 %v1037_v1, %v832_v59  ;;  %v1039_v3 = vpop.f32.mrb[7].mxu1 }
 0x327   :  { %2150 = vtanh.f32 %v1036_v0  ;;  %v1040_v4 = vadd.f32 %v1039_v3, %v836_v60 }
 0x328   :  { %2152 = vtanh.f32 %v1038_v2 }
 0x329   :  { %2154 = vtanh.f32 %v1040_v4 }
 0x330   :  { %v2149_v5 = vpop.eup %2148 }
 0x331   :  { %v2151_v6 = vpop.eup %2150 }
 0x332   :  { %v2153_v7 = vpop.eup %2152 }
 0x333   :  { %v2155_v8 = vpop.eup %2154  ;;  %v1046_v9 = vpack.c.bf16 %v2153_v7, %v2149_v5 }
 0x334   :  { %v1047_v10 = vpack.c.bf16 %v2155_v8, %v2151_v6 }
 0x336   :  { %1486 = vmatprep.mubr.bf16.mxu0 %v1047_v10  ;;  %1529 = vmatprep.mubr.bf16.mxu1 %v1047_v10 }
 0x337   :  { %1487 = vmatmul.mubr.bf16.vlgmr.msra.gmra.mrb[4].mxu0 %v1046_v9  ;;  %1530 = vmatmul.mubr.bf16.vlgmr.msra.gmra.mrb[8].mxu1 %v1046_v9 }
 0x338   :  { %2183 = shalt.err (!%p2180_p4)
}
 0x339   :  { %s2184_s19 = scalar_lea.hbm %s2947_s10, 256 }
 0x33a   :  { %p2185_p5 = scmp.ne.s32.totalorder %s2947_s10, %s2184_s19  ;;  %p2188_p6 = scmp.lt.u32.totalorder %s2184_s19, %s2947_s10 }
 0x33c   :  { %p2190_p7 = pnand %p2188_p6, %p2185_p5 }
 0x33e   :  { %2193 = shalt.err (!%p2190_p7)
}
 0x33f   :  { %s2221_s2 = smov 128   ;;  %s2222_s3 = smov 8   ;;  %v1124_v11 = vsub.s32 2, %v2596_v46  ;;  %v1112_v12 = vld [vmem:[%s2945_s8] sm:$0xf]  ;;  %v1128_v13 = vsub.s32 3, %v2596_v46 }
 0x340   :  { %1616 = dma.vmem_to_hbm [thread:$0]  %s1611_s7, 256, %s2947_s10, [#allocation5], %s2221_s2, %s2221_s2, %s2222_s3   ;;  %v1117_v14 = vrot.slane %v1112_v12, %v2599_v47  ;;  %v1121_v16 = vrot.slane %v1112_v12, %v2605_v49  ;;  %vm1574_vm4 = vcmask 7172  }
 0x341   :  { %v1125_v15 = vrot.slane %v1112_v12, %v1124_v11  ;;  %v1129_v17 = vrot.slane %v1112_v12, %v1128_v13  ;;  %vm1575_vm5 = vmor %vm1574_vm4, %vm1573_vm1  ;;  %s2223_s8 = smov [#allocation2]  }
 0x342   :  { %s1598_s10 = sshll.u32 %s2223_s8, 4  ;;  %s1599_s10 = int_to_ptr.vmem [resolvable:$true] %s1598_s10 }
 0x343   :  { %s2194_s26 = scalar_lea.vmem %s1599_s10, 512  ;;  %p2199_p9 = scmp.lt.s32.totalorder %s1599_s10, %s1599_s10 }
 0x344   :  { %p2195_p8 = scmp.ne.s32.totalorder %s1599_s10, %s2194_s26  ;;  %p2200_p10 = scmp.lt.s32.totalorder %s2194_s26, %s2194_s26 }
 0x346   :  { %p2201_p11 = por %p2200_p10, %p2199_p9 }
 0x348   :  { %p2202_p12 = pnand %p2201_p11, %p2195_p8 }
 0x40a   :  { %v1488_v18 = vpop.f32.mrb[4].mxu0  ;;  %v1531_v19 = vpop.f32.mrb[8].mxu1 }
 0x40b   :  { %v1489_v20 = vadd.f32 %v1488_v18, %v1117_v14  ;;  %v1532_v21 = vadd.f32 %v1531_v19, %v1125_v15  ;;  %v1490_v22 = vpop.f32.mrb[5].mxu0  ;;  %v1533_v23 = vpop.f32.mrb[9].mxu1 }
 0x40c   :  { %v1491_v24 = vadd.f32 %v1490_v22, %v1121_v16  ;;  %v1534_v25 = vadd.f32 %v1533_v23, %v1129_v17  ;;  %v1492_v26 = vpop.f32.mrb[6].mxu0  ;;  %v1535_v27 = vpop.f32.mrb[10].mxu1 }
 0x40d   :  { %2156 = vtanh.f32 %v1489_v20  ;;  %v1493_v28 = vadd.f32 %v1492_v26, %v1117_v14  ;;  %v1494_v29 = vpop.f32.mrb[7].mxu0  ;;  %v1537_v46 = vpop.f32.mrb[11].mxu1  ;;  %v1536_v47 = vadd.f32 %v1535_v27, %v1125_v15 }
 0x40e   :  { %2158 = vtanh.f32 %v1532_v21  ;;  %v1495_v30 = vadd.f32 %v1494_v29, %v1121_v16  ;;  %v1538_v49 = vadd.f32 %v1537_v46, %v1129_v17 }
 0x40f   :  { %2160 = vtanh.f32 %v1491_v24 }
 0x410   :  { %2162 = vtanh.f32 %v1534_v25 }
 0x411   :  { %2164 = vtanh.f32 %v1493_v28 }
 0x412   :  { %2166 = vtanh.f32 %v1536_v47 }
 0x413   :  { %2168 = vtanh.f32 %v1495_v30 }
 0x414   :  { %2170 = vtanh.f32 %v1538_v49 }
 0x417   :  { %v2157_v31 = vpop.eup %2156 }
 0x418   :  { %v2159_v32 = vpop.eup %2158 }
 0x419   :  { %v2161_v33 = vpop.eup %2160 }
 0x41a   :  { %v2163_v34 = vpop.eup %2162  ;;  %v1824_v35 = vpack.c.bf16 %v2161_v33, %v2157_v31 }
 0x41b   :  { %v2165_v36 = vpop.eup %2164  ;;  %v1825_v37 = vpack.c.bf16 %v2163_v34, %v2159_v32 }
 0x41c   :  { %v2167_v38 = vpop.eup %2166  ;;  %1572 = vst [vmem:[#allocation2] sm:$0xff] %v1824_v35 }
 0x41d   :  { %v2169_v39 = vpop.eup %2168  ;;  %1576 = vst.msk [vmem:[#allocation2 + $0x8] sm:$0xff] %vm1575_vm5, %v1825_v37 }
 0x41e   :  { %v2171_v40 = vpop.eup %2170  ;;  %v1826_v41 = vpack.c.bf16 %v2169_v39, %v2165_v36 }
 0x41f   :  { %v1827_v42 = vpack.c.bf16 %v2171_v40, %v2167_v38 }
 0x420   :  { %1577 = vst [vmem:[#allocation2 + $0x10] sm:$0xff] %v1826_v41 }
 0x421   :  { %1578 = vst.msk [vmem:[#allocation2 + $0x18] sm:$0xff] %vm1575_vm5, %v1827_v42 }
 0x422   :  { %2205 = shalt.err (!%p2202_p12)
}
 0x423   :  { %s2206_s28 = scalar_lea.hbm %s2946_s9, 512 }
 0x424   :  { %p2207_p13 = scmp.ne.s32.totalorder %s2946_s9, %s2206_s28  ;;  %p2210_p0 = scmp.lt.u32.totalorder %s2206_s28, %s2946_s9 }
 0x426   :  { %p2212_p1 = pnand %p2210_p0, %p2207_p13 }
 0x428   :  { %2215 = shalt.err (!%p2212_p1)
}
 0x429   :  { %s2224_s12 = smov 256   ;;  %s2225_s13 = smov 16  }
 0x42a   :  { %1604 = dma.vmem_to_hbm [thread:$0]  %s1599_s10, 512, %s2946_s9, [#allocation3], %s2224_s12, %s2224_s12, %s2225_s13  }
 0x42b   :  { %2216 = dma.done.wait [#allocation3], 512  }
 0x42c   :  { %2217 = vsyncadd [#allocation3], 4294966784 }
 0x42d   :  { %2218 = dma.done.wait [#allocation5], 256  }
 0x42e   :  { %2219 = vsyncadd [#allocation5], 4294967040 }
 0x42f   :  { %1623 = vsyncpa [#allocation3], 1 }
 0x430   :  { %1624 = vsyncpa [#allocation5], 1 }

</bundles_post_ra>
